<compile_context>
chip_gen: v6e
topology: v6e:2x2x1
jax: 0.10.0
libtpu: 0.0.40
codegen_flags: <defaults>
</compile_context>

<pallas_src>
import functools

import jax
import jax.numpy as jnp
from jax.experimental import pallas as pl
from jax.experimental.pallas import tpu as pltpu


def _round_up(x, m):
    return (x + m - 1) // m * m


def _padded_tile_bytes(sublanes, lanes, itemsize=4):
    """f32 VMEM footprint of a (sublanes, lanes) tile after (8,128) padding."""
    return _round_up(max(sublanes, 1), 8) * _round_up(max(lanes, 1), 128) * itemsize


def _sparse_concat_conv_kernel(code_ref, x1_ref, x2_ref, wt_ref, wb_ref, out_ref):
    # Fused, transposed 1x1 convs: pixels on the 128-lane axis, channels on
    # sublanes.  The [x1;x2] channel concat never touches HBM:
    #   y = Wt_top @ x1 + Wt_bot @ x2   -> [3*Cout, TP]
    y = (jnp.dot(wt_ref[...], x1_ref[...], preferred_element_type=jnp.float32)
         + jnp.dot(wb_ref[...], x2_ref[...], preferred_element_type=jnp.float32))

    cout = out_ref.shape[0]
    y1 = y[0 * cout:1 * cout, :]          # Conv1 rows (sublane-aligned if Cout % 8 == 0)
    y2 = y[1 * cout:2 * cout, :]          # Conv2 rows
    y3 = y[2 * cout:3 * cout, :]          # Conv3 rows

    # Selector: 0 = neither mask, 1 = only m1, 2 = only m2, 3 = both.
    # Nested where is equivalent to the reference sum-of-gated-products because
    # the three cases are mutually exclusive for binary masks.
    code = code_ref[...]                  # [1, TP], broadcasts over sublanes
    out = jnp.where(code == 3.0, y3,
          jnp.where(code == 2.0, y2,
          jnp.where(code == 1.0, y1, jnp.zeros_like(y1))))
    out_ref[...] = out.astype(out_ref.dtype)


@functools.partial(jax.jit, static_argnames=("tile_p",))
def sparse_concat_conv(x1, m1, x2, m2, w1, w2, w3, tile_p=1024):
    """x1, x2: [B, Cin, H, W] (NCHW); m1, m2: [B, 1, H, W]; w1..3: [2*Cin, Cout].
    Returns (x, m) in NCHW, matching the PyTorch module's forward."""
    B, Cin, H, W = x1.shape
    Cout = w1.shape[1]
    P = H * W
    n_rows = 3 * Cout

    # Free, contiguous reshapes: NCHW -> [B, C, H*W]; no transpose needed.
    x1f = x1.reshape(B, Cin, P)
    x2f = x2.reshape(B, Cin, P)

    # Single tiny selector stream (1 channel) instead of two mask streams.
    code = ((m1 > 0).astype(jnp.float32)
            + 2.0 * (m2 > 0).astype(jnp.float32)).reshape(B, 1, P)

    # Fused transposed weights [3*Cout, 2*Cin], split by concat half so the
    # activation concat is done implicitly by two matmuls.
    w_t = jnp.concatenate([w1.T, w2.T, w3.T], axis=0)      # [3*Cout, 2*Cin]
    wt_top = w_t[:, :Cin]                                   # multiplies x1
    wt_bot = w_t[:, Cin:]                                   # multiplies x2

    # Pixel tile: lane-dense, clamped so tiny images don't over-allocate.
    tp = max(128, _round_up(min(tile_p, _round_up(P, 128)), 128))
    grid = (B, pl.cdiv(P, tp))

    # VMEM budget from padded footprints: double-buffered per-step I/O tiles +
    # (double-buffered) grid-invariant weights + live y_fused/select temps.
    io_bytes = (2 * _padded_tile_bytes(Cin, tp)        # x1, x2 tiles
                + _padded_tile_bytes(1, tp)            # code tile
                + _padded_tile_bytes(Cout, tp))        # output tile
    w_bytes = 2 * _padded_tile_bytes(n_rows, Cin)      # Wt_top, Wt_bot
    live_bytes = 2 * _padded_tile_bytes(n_rows, tp)    # y_fused + select temps
    vmem_limit = int(min(32 << 20,                     # <= v7x scoped default
                         max(2 * io_bytes + 2 * w_bytes + live_bytes + (4 << 20),
                             8 << 20)))

    out_flat = pl.pallas_call(
        _sparse_concat_conv_kernel,
        out_shape=jax.ShapeDtypeStruct((B, Cout, P), jnp.float32),
        grid=grid,
        in_specs=[
            pl.BlockSpec((None, 1, tp), lambda b, i: (b, 0, i)),     # code
            pl.BlockSpec((None, Cin, tp), lambda b, i: (b, 0, i)),   # x1
            pl.BlockSpec((None, Cin, tp), lambda b, i: (b, 0, i)),   # x2
            pl.BlockSpec((n_rows, Cin), lambda b, i: (0, 0)),        # Wt_top (grid-invariant)
            pl.BlockSpec((n_rows, Cin), lambda b, i: (0, 0)),        # Wt_bot (grid-invariant)
        ],
        out_specs=pl.BlockSpec((None, Cout, tp), lambda b, i: (b, 0, i)),
        compiler_params=pltpu.CompilerParams(
            dimension_semantics=("parallel", "parallel"),
            vmem_limit_bytes=vmem_limit,
        ),
    )(code, x1f, x2f, wt_top, wt_bot)

    x_out = out_flat.reshape(B, Cout, H, W)
    # Mask union is independent of the matmuls: compute it directly in NCHW.
    m_out = ((m1 + m2) > 0).astype(jnp.float32)
    return x_out, m_out


def _reference(x1, m1, x2, m2, w1, w2, w3):
    """Pure-JAX reference of the PyTorch forward (1x1 convs as einsum)."""
    x = jnp.concatenate([x1, x2], axis=1)                   # [B, 2Cin, H, W]

    def conv1x1(x, w):                                      # w: [2Cin, Cout]
        return jnp.einsum("bchw,co->bohw", x, w)

    y1 = conv1x1(x, w1)
    y2 = conv1x1(x, w2)
    y3 = conv1x1(x, w3)
    g1 = (m1 > 0).astype(jnp.float32) * (m2 == 0).astype(jnp.float32)
    g2 = (m1 == 0).astype(jnp.float32) * (m2 > 0).astype(jnp.float32)
    g3 = (m1 > 0).astype(jnp.float32) * (m2 > 0).astype(jnp.float32)
    xo = g1 * y1 + g2 * y2 + g3 * y3
    mo = ((m1 + m2) > 0).astype(jnp.float32)
    return xo, mo


if __name__ == "__main__":
    key = jax.random.PRNGKey(0)
    k1, k2, k3, k4, k5, k6, k7 = jax.random.split(key, 7)

    B, Cin, H, W = 2, 4, 16, 16
    Cout = 8

    x1 = jax.random.normal(k1, (B, Cin, H, W), dtype=jnp.float32)
    x2 = jax.random.normal(k2, (B, Cin, H, W), dtype=jnp.float32)
    # Masks in {0, 1}, shape [B, 1, H, W] (broadcast over channels).
    m1 = (jax.random.uniform(k3, (B, 1, H, W)) > 0.5).astype(jnp.float32)
    m2 = (jax.random.uniform(k4, (B, 1, H, W)) > 0.5).astype(jnp.float32)

    # Kaiming-normal (fan_out, relu) init of the 1x1 conv weights.
    # PyTorch weight shape is [Cout, 2*Cin, 1, 1]; stored transposed [2*Cin, Cout].
    std = (2.0 / Cout) ** 0.5
    w1 = std * jax.random.normal(k5, (2 * Cin, Cout), dtype=jnp.float32)
    w2 = std * jax.random.normal(k6, (2 * Cin, Cout), dtype=jnp.float32)
    w3 = std * jax.random.normal(k7, (2 * Cin, Cout), dtype=jnp.float32)
    # Note: self.bias in the PyTorch module is declared but never used in
    # forward(); omitted.

    x_out, m_out = sparse_concat_conv(x1, m1, x2, m2, w1, w2, w3, tile_p=1024)
    jax.block_until_ready((x_out, m_out))

    x_ref, m_ref = _reference(x1, m1, x2, m2, w1, w2, w3)
    assert x_out.shape == (B, Cout, H, W) and m_out.shape == (B, 1, H, W)
    assert jnp.allclose(x_out, x_ref, atol=1e-4, rtol=1e-4), \
        float(jnp.max(jnp.abs(x_out - x_ref)))
    assert jnp.allclose(m_out, m_ref)

    print("KERNEL_OK")
</pallas_src>

<mosaic_0001>
module attributes {stable_mosaic.version = 11 : i64} {
  func.func @_sparse_concat_conv_kernel(%arg0: i32, %arg1: i32, %arg2: memref<1x1x256xf32, #tpu.memory_space<vmem>>, %arg3: memref<1x4x256xf32, #tpu.memory_space<vmem>>, %arg4: memref<1x4x256xf32, #tpu.memory_space<vmem>>, %arg5: memref<24x4xf32, #tpu.memory_space<vmem>>, %arg6: memref<24x4xf32, #tpu.memory_space<vmem>>, %arg7: memref<1x8x256xf32, #tpu.memory_space<vmem>>) attributes {dimension_semantics = [#tpu.dimension_semantics<parallel>, #tpu.dimension_semantics<parallel>], iteration_bounds = array<i64: 2, 1>, scalar_prefetch = 0 : i64, scratch_operands = 0 : i64, tpu.core_type = #tpu.core_type<tc>, window_params = [{transform_indices = @transform_0, window_bounds = array<i64: 1, 1, 256>}, {transform_indices = @transform_1, window_bounds = array<i64: 1, 4, 256>}, {transform_indices = @transform_2, window_bounds = array<i64: 1, 4, 256>}, {pipeline_mode = #tpu.pipeline_mode<synchronous>, transform_indices = @transform_3, window_bounds = array<i64: 24, 4>}, {pipeline_mode = #tpu.pipeline_mode<synchronous>, transform_indices = @transform_4, window_bounds = array<i64: 24, 4>}, {transform_indices = @transform_5, window_bounds = array<i64: 1, 8, 256>}]} {
    %c0 = arith.constant 0 : index
    %c0_0 = arith.constant 0 : index
    %0 = vector.load %arg5[%c0, %c0_0] : memref<24x4xf32, #tpu.memory_space<vmem>>, vector<24x4xf32>
    %c0_1 = arith.constant 0 : index
    %c0_2 = arith.constant 0 : index
    %c0_3 = arith.constant 0 : index
    %1 = vector.load %arg3[%c0_1, %c0_2, %c0_3] : memref<1x4x256xf32, #tpu.memory_space<vmem>>, vector<1x4x256xf32>
    %2 = vector.shape_cast %1 : vector<1x4x256xf32> to vector<4x256xf32>
    %cst = arith.constant dense<0.000000e+00> : vector<24x256xf32>
    %3 = tpu.matmul %0, %2, %cst {dimension_numbers = #tpu.dot_dimension_numbers<[1], [0], [0], [1], [0, 0, 1, 1], [], []>} : vector<24x4xf32>, vector<4x256xf32>, vector<24x256xf32> -> vector<24x256xf32>
    %c0_4 = arith.constant 0 : index
    %c0_5 = arith.constant 0 : index
    %4 = vector.load %arg6[%c0_4, %c0_5] : memref<24x4xf32, #tpu.memory_space<vmem>>, vector<24x4xf32>
    %c0_6 = arith.constant 0 : index
    %c0_7 = arith.constant 0 : index
    %c0_8 = arith.constant 0 : index
    %5 = vector.load %arg4[%c0_6, %c0_7, %c0_8] : memref<1x4x256xf32, #tpu.memory_space<vmem>>, vector<1x4x256xf32>
    %6 = vector.shape_cast %5 : vector<1x4x256xf32> to vector<4x256xf32>
    %cst_9 = arith.constant dense<0.000000e+00> : vector<24x256xf32>
    %7 = tpu.matmul %4, %6, %cst_9 {dimension_numbers = #tpu.dot_dimension_numbers<[1], [0], [0], [1], [0, 0, 1, 1], [], []>} : vector<24x4xf32>, vector<4x256xf32>, vector<24x256xf32> -> vector<24x256xf32>
    %8 = arith.addf %3, %7 : vector<24x256xf32>
    %9 = vector.extract_strided_slice %8 {offsets = [0, 0], sizes = [8, 256], strides = [1, 1]} : vector<24x256xf32> to vector<8x256xf32>
    %10 = vector.extract_strided_slice %8 {offsets = [8, 0], sizes = [8, 256], strides = [1, 1]} : vector<24x256xf32> to vector<8x256xf32>
    %11 = vector.extract_strided_slice %8 {offsets = [16, 0], sizes = [8, 256], strides = [1, 1]} : vector<24x256xf32> to vector<8x256xf32>
    %c0_10 = arith.constant 0 : index
    %c0_11 = arith.constant 0 : index
    %c0_12 = arith.constant 0 : index
    %12 = vector.load %arg2[%c0_10, %c0_11, %c0_12] : memref<1x1x256xf32, #tpu.memory_space<vmem>>, vector<1x1x256xf32>
    %13 = vector.shape_cast %12 : vector<1x1x256xf32> to vector<1x256xf32>
    %cst_13 = arith.constant 3.000000e+00 : f32
    %14 = vector.broadcast %cst_13 : f32 to vector<1x256xf32>
    %15 = arith.cmpf oeq, %13, %14 : vector<1x256xf32>
    %cst_14 = arith.constant 2.000000e+00 : f32
    %16 = vector.broadcast %cst_14 : f32 to vector<1x256xf32>
    %17 = arith.cmpf oeq, %13, %16 : vector<1x256xf32>
    %cst_15 = arith.constant 1.000000e+00 : f32
    %18 = vector.broadcast %cst_15 : f32 to vector<1x256xf32>
    %19 = arith.cmpf oeq, %13, %18 : vector<1x256xf32>
    %cst_16 = arith.constant 0.000000e+00 : f32
    %20 = vector.broadcast %cst_16 : f32 to vector<8x256xf32>
    %21 = vector.shape_cast %19 : vector<1x256xi1> to vector<1x256xi1>
    %22 = vector.broadcast %21 : vector<1x256xi1> to vector<8x256xi1>
    %23 = arith.select %22, %9, %20 : vector<8x256xi1>, vector<8x256xf32>
    %24 = vector.shape_cast %17 : vector<1x256xi1> to vector<1x256xi1>
    %25 = vector.broadcast %24 : vector<1x256xi1> to vector<8x256xi1>
    %26 = arith.select %25, %10, %23 : vector<8x256xi1>, vector<8x256xf32>
    %27 = vector.shape_cast %15 : vector<1x256xi1> to vector<1x256xi1>
    %28 = vector.broadcast %27 : vector<1x256xi1> to vector<8x256xi1>
    %29 = arith.select %28, %11, %26 : vector<8x256xi1>, vector<8x256xf32>
    %c0_17 = arith.constant 0 : index
    %c0_18 = arith.constant 0 : index
    %c0_19 = arith.constant 0 : index
    %30 = vector.load %arg7[%c0_17, %c0_18, %c0_19] : memref<1x8x256xf32, #tpu.memory_space<vmem>>, vector<1x8x256xf32>
    %31 = vector.shape_cast %30 : vector<1x8x256xf32> to vector<8x256xf32>
    %32 = vector.shape_cast %29 : vector<8x256xf32> to vector<1x8x256xf32>
    tpu.vector_store %arg7[%c0_17, %c0_18, %c0_19], %32 {strides = array<i32>} : memref<1x8x256xf32, #tpu.memory_space<vmem>>, vector<1x8x256xf32>,
    return
  }
  func.func @transform_0(%arg0: i32, %arg1: i32) -> (i32, i32, i32) {
    %c0_i32 = arith.constant 0 : i32
    %c0_i32_0 = arith.constant 0 : i32
    return %arg0, %c0_i32, %arg1 : i32, i32, i32
  }
  func.func @transform_1(%arg0: i32, %arg1: i32) -> (i32, i32, i32) {
    %c0_i32 = arith.constant 0 : i32
    %c0_i32_0 = arith.constant 0 : i32
    return %arg0, %c0_i32, %arg1 : i32, i32, i32
  }
  func.func @transform_2(%arg0: i32, %arg1: i32) -> (i32, i32, i32) {
    %c0_i32 = arith.constant 0 : i32
    %c0_i32_0 = arith.constant 0 : i32
    return %arg0, %c0_i32, %arg1 : i32, i32, i32
  }
  func.func @transform_3(%arg0: i32, %arg1: i32) -> (i32, i32) {
    %c0_i32 = arith.constant 0 : i32
    %c0_i32_0 = arith.constant 0 : i32
    %c0_i32_1 = arith.constant 0 : i32
    return %c0_i32, %c0_i32_0 : i32, i32
  }
  func.func @transform_4(%arg0: i32, %arg1: i32) -> (i32, i32) {
    %c0_i32 = arith.constant 0 : i32
    %c0_i32_0 = arith.constant 0 : i32
    %c0_i32_1 = arith.constant 0 : i32
    return %c0_i32, %c0_i32_0 : i32, i32
  }
  func.func @transform_5(%arg0: i32, %arg1: i32) -> (i32, i32, i32) {
    %c0_i32 = arith.constant 0 : i32
    %c0_i32_0 = arith.constant 0 : i32
    return %arg0, %c0_i32, %arg1 : i32, i32, i32
  }
}

</mosaic_0001>

<bundles_post_ra>
// kernel: sparse_concat_conv.1
= control target key start
LH: loop header
LB: loop body
LE: loop exit
PB: predicated region body
PF: predicated region fallthrough
CT: control target
= control target key end

     0   :  { %s815_s18 = smov 0   ;;  %s817_s19 = smov 0   ;;  %s895_s0 = inlined_call_operand.vmem [shape: f32[2,1,256], index: 0, kind: input, shape index: {}]   ;;  %s896_s1 = inlined_call_operand.vmem [shape: f32[2,4,256], index: 1, kind: input, shape index: {}]   ;;  %s897_s2 = inlined_call_operand.vmem [shape: f32[2,4,256], index: 2, kind: input, shape index: {}]   ;;  %s898_s3 = inlined_call_operand.vmem [shape: f32[24,4], index: 3, kind: input, shape index: {}]   ;;  %s899_s4 = inlined_call_operand.vmem [shape: f32[24,4], index: 4, kind: input, shape index: {}]   ;;  %s900_s5 = inlined_call_operand.vmem [shape: f32[2,8,256], index: 5, kind: output, shape index: {}]  }
   0x1   :  { %s819_s20 = smov 0  }
   0x2 LB: > { %s27_s21 = sadd.s32 1, %s777_s19  ;;  %p708_p0 = scmp.ge.s32.totalorder %s781_s20, 1  ;;  %s781_s20 = sphi %s819_s20, %s15_s20   ;;  %s777_s19 = sphi %s817_s19, %s906_s19   ;;  %s773_s18 = sphi %s815_s18, %s905_s18  }
   0x3   : > { %p29_p1 = scmp.ge.s32.totalorder %s27_s21, 2  ;;  %p241_p2 = scmp.lt.s32.totalorder %s781_s20, 3 }
   0x5   : > { %s908_s21 = smov (%p29_p1, %s27_s21), 0  ;;  %p242_p3 = pnand %p708_p0, %p241_p2 }
   0x6   : > { %p295_p4 = scmp.lt.s32.totalorder (!%p242_p3), %s773_s18, 1 }
   0x7   : > { %245 = sbr.rel (%p242_p3) target bundleno = 228 (0xe4), region = 40 }
   0xc   : > { %v783_v0 = vmov 0.0   ;;  %s910_s18 = smov (!%p295_p4, %s773_s18), 1  ;;  %vm353_vm0 = vcmask 1043456   ;;  %v337_v5 = vld [vmem:[%s899_s4] sm:$0xff]  ;;  %vm343_vm1 = vcmask 31744   ;;  %v338_v7 = vld [vmem:[%s899_s4 + $0x8] sm:$0xff]  ;;  %v544_v11 = vlaneseq }
   0xd   : > { %422 = vmatprep.mubr.f32.mxu0 %v783_v0  ;;  %520 = vmatprep.mubr.f32.mxu1 %v783_v0  ;;  %s728_s22 = sshll.u32 %s910_s18, 3  ;;  %v333_v6 = vld [vmem:[%s898_s3] sm:$0xff]  ;;  %v334_v8 = vld [vmem:[%s898_s3 + $0x8] sm:$0xff]  ;;  %v339_v9 = vld [vmem:[%s899_s4 + $0x10] sm:$0xff]  ;;  %s709_s16 = sshll.u32 %s910_s18, 1  ;;  %v784_v15 = vmov 0  }
   0xe   : > { %s321_s25 = scalar_lea.vmem %s897_s2, %s728_s22  ;;  %s311_s28 = scalar_lea.vmem %s896_s1, %s728_s22  ;;  %v335_v10 = vld [vmem:[%s898_s3 + $0x10] sm:$0xff]  ;;  %v545_v13 = vshrl.u32 %v544_v11, 7 }
   0xf   : > { %v340_v1 = vld [vmem:[%s321_s25] sm:$0xff]  ;;  %s301_s23 = scalar_lea.vmem %s895_s0, %s709_s16  ;;  %s730_s24 = sshll.u32 %s910_s18, 4 }
  0x10   : > { %v336_v2 = vld [vmem:[%s311_s28] sm:$0xff]  ;;  %v342_v3 = vcombine.high %v340_v1, %v340_v1  ;;  %v546_v14 = vsub.s32 0, %v545_v13  ;;  %v550_v19 = vsub.s32 1, %v545_v13  ;;  %s331_s27 = scalar_lea.vmem %s900_s5, %s730_s24 }
  0x11   : > { %v442_v4 = vcombine.high %v336_v2, %v336_v2  ;;  %v539_v12 = vld [vmem:[%s301_s23] sm:$0x3] }
  0x12   : > { %716 = vmatprep.subr.msk.mxu0 %vm353_vm0, %v342_v3  ;;  %vm542_vm2 = vcmp.eq.f32.partialorder %v539_v12, 1.0  ;;  %vm541_vm3 = vcmp.eq.f32.partialorder %v539_v12, 2.0  ;;  %vm540_vm4 = vcmp.eq.f32.partialorder %v539_v12, 3.0 }
  0x13   : > { %721 = vmatprep.subr.msk.mxu1 %vm353_vm0, %v442_v4  ;;  %717 = vmatpush1.msk.msra.mxu0 %vm353_vm0, %v340_v1  ;;  %v543_v16 = vsel %vm542_vm2, 1, %v784_v15  ;;  %v556_v20 = vsel %vm541_vm3, 1, %v784_v15  ;;  %v569_v21 = vsel %vm540_vm4, 1, %v784_v15 }
  0x14   : > { %722 = vmatpush1.msk.msra.mxu1 %vm353_vm0, %v336_v2  ;;  %718 = vmatmul.mubr.msk.f32.vlgmr.msra.gmra.mxu0 %vm343_vm1, %v337_v5  ;;  %v547_v22 = vrot.slane %v543_v16, %v546_v14  ;;  %v560_v25 = vrot.slane %v556_v20, %v546_v14  ;;  %v551_v26 = vrot.slane %v543_v16, %v550_v19 }
  0x15   : > { %723 = vmatmul.mubr.msk.f32.vlgmr.msra.gmra.mxu1 %vm343_vm1, %v333_v6  ;;  %428 = vmatprep.mubr.f32.mxu0 %v783_v0  ;;  %v573_v29 = vrot.slane %v569_v21, %v546_v14  ;;  %v564_v31 = vrot.slane %v556_v20, %v550_v19  ;;  %v577_v36 = vrot.slane %v569_v21, %v550_v19 }
  0x16   : > { %526 = vmatprep.mubr.f32.mxu1 %v783_v0  ;;  %vm870_vm5 = vcmp.eq.s32.totalorder %v547_v22, 1  ;;  %vm565_vm6 = vcmp.eq.s32.totalorder %v560_v25, 1  ;;  %vm875_vm7 = vcmp.eq.s32.totalorder %v551_v26, 1 }
  0x17   : > { %vm578_vm8 = vcmp.eq.s32.totalorder %v573_v29, 1  ;;  %vm566_vm9 = vcmp.eq.s32.totalorder %v564_v31, 1  ;;  %vm579_vm10 = vcmp.eq.s32.totalorder %v577_v36, 1 }
  0x18   : > { %719 = vmatmul.mubr.msk.f32.gmra.mxu0 %vm343_vm1, %v338_v7 }
  0x19   : > { %724 = vmatmul.mubr.msk.f32.gmra.mxu1 %vm343_vm1, %v334_v8  ;;  %434 = vmatprep.mubr.f32.mxu0 %v783_v0 }
  0x1a   : > { %532 = vmatprep.mubr.f32.mxu1 %v783_v0 }
  0x1c   : > { %720 = vmatmul.mubr.msk.f32.gmra.mxu0 %vm343_vm1, %v339_v9 }
  0x1d   : > { %725 = vmatmul.mubr.msk.f32.gmra.mxu1 %vm343_vm1, %v335_v10 }
  0xd4   : > { %v424_v17 = vpop.f32.mrf.mxu0 }
  0xd5   : > { %v522_v18 = vpop.f32.mrf.mxu1 }
  0xd6   : > { %v426_v23 = vpop.f32.mrf.mxu0  ;;  %v523_v30 = vadd.f32 %v522_v18, %v424_v17 }
  0xd7   : > { %v524_v24 = vpop.f32.mrf.mxu1 }
  0xd8   : > { %v430_v27 = vpop.f32.mrf.mxu0  ;;  %v525_v37 = vadd.f32 %v524_v24, %v426_v23  ;;  %v554_v42 = vsel %vm870_vm5, %v523_v30, 0.0 }
  0xd9   : > { %v528_v28 = vpop.f32.mrf.mxu1 }
  0xda   : > { %v529_v33 = vadd.f32 %v528_v28, %v430_v27  ;;  %v432_v34 = vpop.f32.mrf.mxu0  ;;  %v555_v47 = vsel %vm875_vm7, %v525_v37, 0.0 }
  0xdb   : > { %v530_v35 = vpop.f32.mrf.mxu1 }
  0xdc   : > { %v531_v39 = vadd.f32 %v530_v35, %v432_v34  ;;  %v436_v40 = vpop.f32.mrf.mxu0  ;;  %v567_v44 = vsel %vm565_vm6, %v529_v33, %v554_v42 }
  0xdd   : > { %v534_v41 = vpop.f32.mrf.mxu1 }
  0xde   : > { %v535_v43 = vadd.f32 %v534_v41, %v436_v40  ;;  %v438_v45 = vpop.f32.mrf.mxu0  ;;  %v568_v50 = vsel %vm566_vm9, %v531_v39, %v555_v47 }
  0xdf   : > { %v536_v46 = vpop.f32.mrf.mxu1 }
  0xe0   : > { %v580_v48 = vsel %vm578_vm8, %v535_v43, %v567_v44  ;;  %v537_v49 = vadd.f32 %v536_v46, %v438_v45 }
  0xe1   : > { %582 = vst [vmem:[%s331_s27] sm:$0xff] %v580_v48 }
  0xe2   : > { %v581_v51 = vsel %vm579_vm10, %v537_v49, %v568_v50 }
  0xe3   : > { %583 = vst [vmem:[%s331_s27 + $0x8] sm:$0xff] %v581_v51 }
  0xe4 PF: > { %s15_s20 = sadd.s32 1, %s781_s20   ;;  %s905_s18 = smov %s777_s19 }
  0xe5   : > { %p12_p5 = scmp.ge.s32.totalorder %s15_s20, 4   ;;  %s906_s19 = smov %s908_s21 }
  0xe7   :  { %14 = sbr.rel (!%p12_p5) target bundleno = 2 (0x2), region = 76 }

</bundles_post_ra>
